<compile_context>
chip_gen: v5e
topology: v5e:2x2
jax: 0.10.0
libtpu: 0.0.40
codegen_flags: <defaults>
</compile_context>

<pallas_src>
import math

import jax
import jax.numpy as jnp
import numpy as np
from jax.experimental import pallas as pl
from jax.experimental.pallas import tpu as pltpu


# ----------------------------------------------------------------------------
# Fused BasicBlock kernel (B = batch_tile images per grid step)
# ----------------------------------------------------------------------------
def _make_block_kernel(stride, H, W, Cin, Cout, H1, W1, B, has_proj):
    K0 = W * Cin           # input-slab lane width
    L1 = W1 * Cout         # conv / output lane width
    M = B * H1             # matmul M dimension

    def kernel(gate_sref, xp_ref, wb1_ref, wb2_ref, bias_ref, *rest):
        if has_proj:
            scw_ref, out_ref, pad_ref = rest
        else:
            out_ref, pad_ref = rest

        base = pl.program_id(0) * B

        # Is any image in this tile gated on?  (pure SMEM-scalar arithmetic.)
        any_on = gate_sref[base] != 0
        for b in range(1, B):
            any_on = jnp.logical_or(any_on, gate_sref[base + b] != 0)

        def shortcut():
            """(B, H1, L1) f32 shortcut branch, recomputed inside each pl.when
            body so the cond bodies only close over refs / scalars."""
            if has_proj:
                if stride == 1:
                    xs = xp_ref[:, 1:H1 + 1, :]
                else:
                    xs = xp_ref[:, 1:1 + (H1 - 1) * stride + 1:stride, :]
                sc = jnp.dot(xs.reshape(M, K0), scw_ref[...],
                             preferred_element_type=jnp.float32)
                sc = sc + bias_ref[2:3, :]
            else:
                sc = xp_ref[:, 1:H1 + 1, :].reshape(M, L1).astype(jnp.float32)
            return sc.reshape(B, H1, L1)

        @pl.when(any_on)
        def _():
            # ---- conv1 (3x3 / stride) + BN1 + ReLU: 3 banded MXU matmuls ----
            acc1 = jnp.zeros((M, L1), jnp.float32)
            for ky in range(3):
                if stride == 1:
                    band = xp_ref[:, ky:ky + H1, :]
                else:
                    band = xp_ref[:, ky:ky + (H1 - 1) * stride + 1:stride, :]
                acc1 = acc1 + jnp.dot(band.reshape(M, K0), wb1_ref[ky],
                                      preferred_element_type=jnp.float32)
            y1 = jnp.maximum(acc1 + bias_ref[0:1, :], 0.0)

            # stage y1 on-chip (lane-dense, zero border rows) for conv2
            pad_ref[:, 0:1, :] = jnp.zeros((B, 1, L1), pad_ref.dtype)
            pad_ref[:, H1 + 1:H1 + 2, :] = jnp.zeros((B, 1, L1), pad_ref.dtype)
            pad_ref[:, 1:H1 + 1, :] = (
                y1.reshape(B, H1, L1).astype(pad_ref.dtype))

            # ---- conv2 (3x3 / 1) + BN2: 3 banded MXU matmuls ----------------
            acc2 = jnp.zeros((M, L1), jnp.float32)
            for ky in range(3):
                band2 = pad_ref[:, ky:ky + H1, :]
                acc2 = acc2 + jnp.dot(band2.reshape(M, L1), wb2_ref[ky],
                                      preferred_element_type=jnp.float32)
            y2 = (acc2 + bias_ref[1:2, :]).reshape(B, H1, L1)

            # ---- gated residual + ReLU (per-image SMEM-scalar gate) ---------
            sc3 = shortcut()
            for b in range(B):
                gf = (gate_sref[base + b] != 0).astype(jnp.float32)
                out_ref[b] = jnp.maximum(sc3[b] + y2[b] * gf,
                                         0.0).astype(out_ref.dtype)

        @pl.when(jnp.logical_not(any_on))
        def _():
            # every image in the tile is gated off: out = relu(shortcut(x))
            out_ref[...] = jnp.maximum(shortcut(), 0.0).astype(out_ref.dtype)

    return kernel


# ----------------------------------------------------------------------------
# Wrapper: NCHW in / NCHW out
# ----------------------------------------------------------------------------
def basic_block_forward(params, x_nchw, gumbel_noise, stride=1, batch_tile=None):
    """Pallas BasicBlock forward: x NCHW f32 -> (out NCHW f32, gate (N,) f32)."""
    x = jnp.transpose(x_nchw, (0, 2, 3, 1))                      # NHWC, f32
    N, H, W, Cin = x.shape
    Cout = params['conv1_w'].shape[-1]
    has_proj = 'sc_w' in params
    if not has_proj:
        assert stride == 1 and Cin == Cout, (
            "identity shortcut requires stride == 1 and in_planes == planes")
    H1 = (H + 2 - 3) // stride + 1
    W1 = (W + 2 - 3) // stride + 1
    K0, L1 = W * Cin, W1 * Cout

    # ---- gate head in f32 (tiny; runs ahead of the kernel, feeds pl.when) ---
    gap = jnp.mean(x, axis=(1, 2))                               # (N, Cin)
    hh = gap @ params['fc1_w'] + params['fc1_b']
    hh = jnp.maximum(hh * params['fc1bn_scale'] + params['fc1bn_bias'], 0.0)
    logits = hh @ params['fc2_w'] + params['fc2_b']
    z = logits + gumbel_noise
    gate = z[:, 1] > z[:, 0]                                     # (N,) bool
    gate_i32 = gate.astype(jnp.int32)

    # ---- batch tile / grid (>=2 steps when possible for v7x 2-TC sharding) --
    if batch_tile is None:
        batch_tile = max(1, min(8, N // 2)) if N >= 2 else 1
        while N % batch_tile != 0:
            batch_tile -= 1
    assert N % batch_tile == 0
    B = batch_tile
    grid_n = N // B

    # ---- lane-dense, row-padded input slab (bf16, read from HBM once) -------
    xp = jnp.pad(x, ((0, 0), (1, 1), (0, 0), (0, 0)))
    xp = xp.astype(jnp.bfloat16).reshape(N, H + 2, K0)

    # ---- banded conv weights (BN scale folded, bf16) -------------------------
    def band3x3(w, scale, w_in, c_in, w_out, c_out, s):
        wf = w * scale.reshape(1, 1, 1, c_out)
        kx = np.arange(3)
        sel = (np.arange(w_in)[None, :, None]
               == np.arange(w_out)[None, None, :] * s + kx[:, None, None] - 1)
        band = jnp.einsum('ykco,kjx->yjcxo', wf, jnp.asarray(sel, jnp.float32))
        return band.reshape(3, w_in * c_in, w_out * c_out).astype(jnp.bfloat16)

    wb1 = band3x3(params['conv1_w'], params['bn1_scale'].reshape(-1),
                  W, Cin, W1, Cout, stride)
    wb2 = band3x3(params['conv2_w'], params['bn2_scale'].reshape(-1),
                  W1, Cout, W1, Cout, 1)

    tile_c = lambda v: jnp.tile(v.reshape(1, Cout), (1, W1)).astype(jnp.float32)
    if has_proj:
        scwf = params['sc_w'] * params['sc_scale'].reshape(1, Cout)
        sel1 = (np.arange(W)[:, None] == np.arange(W1)[None, :] * stride)
        sc_band = jnp.einsum('co,jx->jcxo', scwf, jnp.asarray(sel1, jnp.float32))
        sc_band = sc_band.reshape(K0, L1).astype(jnp.bfloat16)
        sc_bias = tile_c(params['sc_bias'])
    else:
        sc_band = None
        sc_bias = jnp.zeros((1, L1), jnp.float32)
    bias_pack = jnp.concatenate(
        [tile_c(params['bn1_bias']), tile_c(params['bn2_bias']), sc_bias], axis=0)

    # ---- pallas_call ----------------------------------------------------------
    in_specs = [
        pl.BlockSpec((B, H + 2, K0), lambda n, g: (n, 0, 0)),    # input slab
        pl.BlockSpec((3, K0, L1), lambda n, g: (0, 0, 0)),       # conv1 bands
        pl.BlockSpec((3, L1, L1), lambda n, g: (0, 0, 0)),       # conv2 bands
        pl.BlockSpec((3, L1), lambda n, g: (0, 0)),              # bias pack
    ]
    args = [xp, wb1, wb2, bias_pack]
    if has_proj:
        in_specs.append(pl.BlockSpec((K0, L1), lambda n, g: (0, 0)))
        args.append(sc_band)

    out_slab = pl.pallas_call(
        _make_block_kernel(stride, H, W, Cin, Cout, H1, W1, B, has_proj),
        grid_spec=pltpu.PrefetchScalarGridSpec(
            num_scalar_prefetch=1,
            grid=(grid_n,),
            in_specs=in_specs,
            out_specs=pl.BlockSpec((B, H1, L1), lambda n, g: (n, 0, 0)),
            scratch_shapes=[pltpu.VMEM((B, H1 + 2, L1), jnp.bfloat16)]),
        out_shape=jax.ShapeDtypeStruct((N, H1, L1), jnp.bfloat16),
        compiler_params=pltpu.CompilerParams(
            dimension_semantics=("parallel",),
            vmem_limit_bytes=32 * 1024 * 1024),
    )(gate_i32, *args)

    out = jnp.transpose(out_slab.reshape(N, H1, W1, Cout), (0, 3, 1, 2))
    return out.astype(jnp.float32), gate.astype(jnp.float32)


# ----------------------------------------------------------------------------
# Deterministic parameter init (eval-mode BN folded into scale/bias)
# ----------------------------------------------------------------------------
def _bn_params(key, c, eps=1e-5):
    k1, k2, k3, k4 = jax.random.split(key, 4)
    gamma = jax.random.uniform(k1, (c,), minval=0.5, maxval=1.5)
    beta = 0.1 * jax.random.normal(k2, (c,))
    mean = 0.1 * jax.random.normal(k3, (c,))
    var = jax.random.uniform(k4, (c,), minval=0.5, maxval=1.5)
    scale = gamma / jnp.sqrt(var + eps)
    bias = beta - mean * scale
    return scale[None, :].astype(jnp.float32), bias[None, :].astype(jnp.float32)


def init_params(key, in_planes, planes, stride=1):
    ks = jax.random.split(key, 10)
    p = {}
    p['conv1_w'] = (jax.random.normal(ks[0], (3, 3, in_planes, planes), jnp.float32)
                    / math.sqrt(9 * in_planes))
    p['bn1_scale'], p['bn1_bias'] = _bn_params(ks[1], planes)
    p['conv2_w'] = (jax.random.normal(ks[2], (3, 3, planes, planes), jnp.float32)
                    / math.sqrt(9 * planes))
    p['bn2_scale'], p['bn2_bias'] = _bn_params(ks[3], planes)
    p['fc1_w'] = (jax.random.normal(ks[4], (in_planes, 16), jnp.float32)
                  / math.sqrt(in_planes))
    p['fc1_b'] = 0.1 * jax.random.normal(ks[5], (1, 16), jnp.float32)
    p['fc1bn_scale'], p['fc1bn_bias'] = _bn_params(ks[6], 16)
    p['fc2_w'] = jax.random.normal(ks[7], (16, 2), jnp.float32) / math.sqrt(16)
    p['fc2_b'] = jnp.array([[0.1, 2.0]], jnp.float32)     # bias init from module
    if stride != 1 or in_planes != planes:
        p['sc_w'] = (jax.random.normal(ks[8], (in_planes, planes), jnp.float32)
                     / math.sqrt(in_planes))
        p['sc_scale'], p['sc_bias'] = _bn_params(ks[9], planes)
    return p


# ----------------------------------------------------------------------------
# Pure-JAX reference (mirrors the kernel's bf16/f32 precision choices)
# ----------------------------------------------------------------------------
def reference_forward(params, x_nchw, gumbel_noise, stride=1):
    x = jnp.transpose(x_nchw, (0, 2, 3, 1))                      # NHWC f32

    # gate head in f32 (identical ops to the wrapper)
    gap = jnp.mean(x, axis=(1, 2))
    hh = gap @ params['fc1_w'] + params['fc1_b']
    hh = jnp.maximum(hh * params['fc1bn_scale'] + params['fc1bn_bias'], 0.0)
    logits = hh @ params['fc2_w'] + params['fc2_b']
    z = logits + gumbel_noise
    gate = (z[:, 1] > z[:, 0]).astype(jnp.float32)

    xb = x.astype(jnp.bfloat16)

    def conv3(xn, w, s):
        return jax.lax.conv_general_dilated(
            xn, w.astype(jnp.bfloat16), (s, s), ((1, 1), (1, 1)),
            dimension_numbers=('NHWC', 'HWIO', 'NHWC'),
            preferred_element_type=jnp.float32)

    c = lambda v: v.reshape(1, 1, 1, -1)
    w1f = params['conv1_w'] * c(params['bn1_scale'])
    out1 = jnp.maximum(conv3(xb, w1f, stride) + c(params['bn1_bias']), 0.0)
    w2f = params['conv2_w'] * c(params['bn2_scale'])
    out2 = conv3(out1.astype(jnp.bfloat16), w2f, 1) + c(params['bn2_bias'])
    if 'sc_w' in params:
        xs = xb[:, ::stride, ::stride, :]
        scwf = (params['sc_w'] * params['sc_scale'].reshape(1, -1)
                ).astype(jnp.bfloat16)
        sc = jnp.einsum('nhwc,co->nhwo', xs, scwf,
                        preferred_element_type=jnp.float32) + c(params['sc_bias'])
    else:
        sc = xb.astype(jnp.float32)
    out = jnp.maximum(sc + out2 * gate[:, None, None, None], 0.0)
    return jnp.transpose(out, (0, 3, 1, 2)), gate


# ----------------------------------------------------------------------------
if __name__ == "__main__":
    key = jax.random.PRNGKey(0)
    kx, kp1, kp2, kn = jax.random.split(key, 4)

    N, Cin, H, W = 2, 8, 16, 16
    x = jax.random.normal(kx, (N, Cin, H, W), jnp.float32)

    # deterministic gumbel noise, matching sample_gumbel_like semantics
    eps = 1e-10
    u = jax.random.uniform(kn, (N, 2), jnp.float32)
    gumbel_noise = -jnp.log(eps - jnp.log(u + eps))

    # config 1: identity shortcut (in_planes == planes, stride 1)
    params1 = init_params(kp1, Cin, Cin, stride=1)
    out1, g1 = basic_block_forward(params1, x, gumbel_noise, stride=1)
    out1, g1 = jax.block_until_ready((out1, g1))
    r_out1, r_g1 = reference_forward(params1, x, gumbel_noise, stride=1)
    assert out1.shape == (N, Cin, H, W) and g1.shape == (N,)
    np.testing.assert_allclose(np.asarray(out1), np.asarray(r_out1),
                               rtol=2e-2, atol=2e-2)
    np.testing.assert_array_equal(np.asarray(g1), np.asarray(r_g1))

    # config 2: projection shortcut (in_planes != planes, stride 1)
    planes2 = 16
    params2 = init_params(kp2, Cin, planes2, stride=1)
    out2, g2 = basic_block_forward(params2, x, gumbel_noise, stride=1)
    out2, g2 = jax.block_until_ready((out2, g2))
    r_out2, r_g2 = reference_forward(params2, x, gumbel_noise, stride=1)
    assert out2.shape == (N, planes2, H, W) and g2.shape == (N,)
    np.testing.assert_allclose(np.asarray(out2), np.asarray(r_out2),
                               rtol=2e-2, atol=2e-2)
    np.testing.assert_array_equal(np.asarray(g2), np.asarray(r_g2))

    print("KERNEL_OK")
</pallas_src>

<mosaic_0001>
module attributes {stable_mosaic.version = 11 : i64} {
  func.func @kernel(%arg0: i32, %arg1: memref<2xi32, #tpu.memory_space<smem>>, %arg2: memref<1x18x128xbf16, #tpu.memory_space<vmem>>, %arg3: memref<3x128x128xbf16, #tpu.memory_space<vmem>>, %arg4: memref<3x128x128xbf16, #tpu.memory_space<vmem>>, %arg5: memref<3x128xf32, #tpu.memory_space<vmem>>, %arg6: memref<1x16x128xbf16, #tpu.memory_space<vmem>>, %arg7: memref<1x18x128xbf16, #tpu.memory_space<vmem>>) attributes {dimension_semantics = [#tpu.dimension_semantics<parallel>], iteration_bounds = array<i64: 2>, scalar_prefetch = 1 : i64, scratch_operands = 1 : i64, tpu.core_type = #tpu.core_type<tc>, window_params = [{transform_indices = @transform_0, window_bounds = array<i64: 1, 18, 128>}, {pipeline_mode = #tpu.pipeline_mode<synchronous>, transform_indices = @transform_1, window_bounds = array<i64: 3, 128, 128>}, {pipeline_mode = #tpu.pipeline_mode<synchronous>, transform_indices = @transform_2, window_bounds = array<i64: 3, 128, 128>}, {pipeline_mode = #tpu.pipeline_mode<synchronous>, transform_indices = @transform_3, window_bounds = array<i64: 3, 128>}, {transform_indices = @transform_4, window_bounds = array<i64: 1, 16, 128>}]} {
    %c1_i32 = arith.constant 1 : i32
    %0 = arith.muli %arg0, %c1_i32 : i32
    %1 = arith.index_cast %0 : i32 to index
    %2 = memref.load %arg1[%1] : memref<2xi32, #tpu.memory_space<smem>>
    %c0_i32 = arith.constant 0 : i32
    %3 = arith.cmpi ne, %2, %c0_i32 : i32
    %4 = arith.extui %3 : i1 to i32
    %c0_i32_0 = arith.constant 0 : i32
    %5 = arith.cmpi ne, %4, %c0_i32_0 : i32
    scf.if %5 {
      %cst = arith.constant 0.000000e+00 : f32
      %9 = vector.broadcast %cst : f32 to vector<16x128xf32>
      %c0 = arith.constant 0 : index
      %c0_2 = arith.constant 0 : index
      %c0_3 = arith.constant 0 : index
      %10 = vector.load %arg2[%c0, %c0_2, %c0_3] : memref<1x18x128xbf16, #tpu.memory_space<vmem>>, vector<1x16x128xbf16>
      %11 = vector.shape_cast %10 : vector<1x16x128xbf16> to vector<16x128xbf16>
      %c0_4 = arith.constant 0 : index
      %c0_5 = arith.constant 0 : index
      %c0_6 = arith.constant 0 : index
      %12 = vector.load %arg3[%c0_4, %c0_5, %c0_6] : memref<3x128x128xbf16, #tpu.memory_space<vmem>>, vector<1x128x128xbf16>
      %13 = vector.shape_cast %12 : vector<1x128x128xbf16> to vector<128x128xbf16>
      %cst_7 = arith.constant dense<0.000000e+00> : vector<16x128xf32>
      %14 = tpu.matmul %11, %13, %cst_7 {dimension_numbers = #tpu.dot_dimension_numbers<[1], [0], [0], [1], [0, 0, 1, 1], [], []>} : vector<16x128xbf16>, vector<128x128xbf16>, vector<16x128xf32> -> vector<16x128xf32>
      %15 = arith.addf %9, %14 : vector<16x128xf32>
      %c0_8 = arith.constant 0 : index
      %c1 = arith.constant 1 : index
      %c0_9 = arith.constant 0 : index
      %16 = vector.load %arg2[%c0_8, %c1, %c0_9] : memref<1x18x128xbf16, #tpu.memory_space<vmem>>, vector<1x16x128xbf16>
      %17 = vector.shape_cast %16 : vector<1x16x128xbf16> to vector<16x128xbf16>
      %c1_10 = arith.constant 1 : index
      %c0_11 = arith.constant 0 : index
      %c0_12 = arith.constant 0 : index
      %18 = vector.load %arg3[%c1_10, %c0_11, %c0_12] : memref<3x128x128xbf16, #tpu.memory_space<vmem>>, vector<1x128x128xbf16>
      %19 = vector.shape_cast %18 : vector<1x128x128xbf16> to vector<128x128xbf16>
      %cst_13 = arith.constant dense<0.000000e+00> : vector<16x128xf32>
      %20 = tpu.matmul %17, %19, %cst_13 {dimension_numbers = #tpu.dot_dimension_numbers<[1], [0], [0], [1], [0, 0, 1, 1], [], []>} : vector<16x128xbf16>, vector<128x128xbf16>, vector<16x128xf32> -> vector<16x128xf32>
      %21 = arith.addf %15, %20 : vector<16x128xf32>
      %c0_14 = arith.constant 0 : index
      %c2 = arith.constant 2 : index
      %c0_15 = arith.constant 0 : index
      %22 = vector.load %arg2[%c0_14, %c2, %c0_15] : memref<1x18x128xbf16, #tpu.memory_space<vmem>>, vector<1x16x128xbf16>
      %23 = vector.shape_cast %22 : vector<1x16x128xbf16> to vector<16x128xbf16>
      %c2_16 = arith.constant 2 : index
      %c0_17 = arith.constant 0 : index
      %c0_18 = arith.constant 0 : index
      %24 = vector.load %arg3[%c2_16, %c0_17, %c0_18] : memref<3x128x128xbf16, #tpu.memory_space<vmem>>, vector<1x128x128xbf16>
      %25 = vector.shape_cast %24 : vector<1x128x128xbf16> to vector<128x128xbf16>
      %cst_19 = arith.constant dense<0.000000e+00> : vector<16x128xf32>
      %26 = tpu.matmul %23, %25, %cst_19 {dimension_numbers = #tpu.dot_dimension_numbers<[1], [0], [0], [1], [0, 0, 1, 1], [], []>} : vector<16x128xbf16>, vector<128x128xbf16>, vector<16x128xf32> -> vector<16x128xf32>
      %27 = arith.addf %21, %26 : vector<16x128xf32>
      %c0_20 = arith.constant 0 : index
      %c0_21 = arith.constant 0 : index
      %28 = vector.load %arg5[%c0_20, %c0_21] : memref<3x128xf32, #tpu.memory_space<vmem>>, vector<1x128xf32>
      %29 = vector.broadcast %28 : vector<1x128xf32> to vector<16x128xf32>
      %30 = arith.addf %27, %29 : vector<16x128xf32>
      %cst_22 = arith.constant 0.000000e+00 : f32
      %31 = vector.broadcast %cst_22 : f32 to vector<16x128xf32>
      %32 = arith.maximumf %30, %31 : vector<16x128xf32>
      %cst_23 = arith.constant 0.000000e+00 : bf16
      %33 = vector.broadcast %cst_23 : bf16 to vector<1x1x128xbf16>
      %c0_24 = arith.constant 0 : index
      %c0_25 = arith.constant 0 : index
      %c0_26 = arith.constant 0 : index
      %34 = vector.load %arg7[%c0_24, %c0_25, %c0_26] : memref<1x18x128xbf16, #tpu.memory_space<vmem>>, vector<1x1x128xbf16>
      tpu.vector_store %arg7[%c0_24, %c0_25, %c0_26], %33 {strides = array<i32>} : memref<1x18x128xbf16, #tpu.memory_space<vmem>>, vector<1x1x128xbf16>,
      %cst_27 = arith.constant 0.000000e+00 : bf16
      %35 = vector.broadcast %cst_27 : bf16 to vector<1x1x128xbf16>
      %c0_28 = arith.constant 0 : index
      %c17 = arith.constant 17 : index
      %c0_29 = arith.constant 0 : index
      %36 = vector.load %arg7[%c0_28, %c17, %c0_29] : memref<1x18x128xbf16, #tpu.memory_space<vmem>>, vector<1x1x128xbf16>
      tpu.vector_store %arg7[%c0_28, %c17, %c0_29], %35 {strides = array<i32>} : memref<1x18x128xbf16, #tpu.memory_space<vmem>>, vector<1x1x128xbf16>,
      %37 = vector.shape_cast %32 : vector<16x128xf32> to vector<1x16x128xf32>
      %38 = arith.truncf %37 : vector<1x16x128xf32> to vector<1x16x128xbf16>
      %c0_30 = arith.constant 0 : index
      %c1_31 = arith.constant 1 : index
      %c0_32 = arith.constant 0 : index
      %39 = vector.load %arg7[%c0_30, %c1_31, %c0_32] : memref<1x18x128xbf16, #tpu.memory_space<vmem>>, vector<1x16x128xbf16>
      tpu.vector_store %arg7[%c0_30, %c1_31, %c0_32], %38 {strides = array<i32>} : memref<1x18x128xbf16, #tpu.memory_space<vmem>>, vector<1x16x128xbf16>,
      %cst_33 = arith.constant 0.000000e+00 : f32
      %40 = vector.broadcast %cst_33 : f32 to vector<16x128xf32>
      %c0_34 = arith.constant 0 : index
      %c0_35 = arith.constant 0 : index
      %c0_36 = arith.constant 0 : index
      %41 = vector.load %arg7[%c0_34, %c0_35, %c0_36] : memref<1x18x128xbf16, #tpu.memory_space<vmem>>, vector<1x16x128xbf16>
      %42 = vector.shape_cast %41 : vector<1x16x128xbf16> to vector<16x128xbf16>
      %c0_37 = arith.constant 0 : index
      %c0_38 = arith.constant 0 : index
      %c0_39 = arith.constant 0 : index
      %43 = vector.load %arg4[%c0_37, %c0_38, %c0_39] : memref<3x128x128xbf16, #tpu.memory_space<vmem>>, vector<1x128x128xbf16>
      %44 = vector.shape_cast %43 : vector<1x128x128xbf16> to vector<128x128xbf16>
      %cst_40 = arith.constant dense<0.000000e+00> : vector<16x128xf32>
      %45 = tpu.matmul %42, %44, %cst_40 {dimension_numbers = #tpu.dot_dimension_numbers<[1], [0], [0], [1], [0, 0, 1, 1], [], []>} : vector<16x128xbf16>, vector<128x128xbf16>, vector<16x128xf32> -> vector<16x128xf32>
      %46 = arith.addf %40, %45 : vector<16x128xf32>
      %c0_41 = arith.constant 0 : index
      %c1_42 = arith.constant 1 : index
      %c0_43 = arith.constant 0 : index
      %47 = vector.load %arg7[%c0_41, %c1_42, %c0_43] : memref<1x18x128xbf16, #tpu.memory_space<vmem>>, vector<1x16x128xbf16>
      %48 = vector.shape_cast %47 : vector<1x16x128xbf16> to vector<16x128xbf16>
      %c1_44 = arith.constant 1 : index
      %c0_45 = arith.constant 0 : index
      %c0_46 = arith.constant 0 : index
      %49 = vector.load %arg4[%c1_44, %c0_45, %c0_46] : memref<3x128x128xbf16, #tpu.memory_space<vmem>>, vector<1x128x128xbf16>
      %50 = vector.shape_cast %49 : vector<1x128x128xbf16> to vector<128x128xbf16>
      %cst_47 = arith.constant dense<0.000000e+00> : vector<16x128xf32>
      %51 = tpu.matmul %48, %50, %cst_47 {dimension_numbers = #tpu.dot_dimension_numbers<[1], [0], [0], [1], [0, 0, 1, 1], [], []>} : vector<16x128xbf16>, vector<128x128xbf16>, vector<16x128xf32> -> vector<16x128xf32>
      %52 = arith.addf %46, %51 : vector<16x128xf32>
      %c0_48 = arith.constant 0 : index
      %c2_49 = arith.constant 2 : index
      %c0_50 = arith.constant 0 : index
      %53 = vector.load %arg7[%c0_48, %c2_49, %c0_50] : memref<1x18x128xbf16, #tpu.memory_space<vmem>>, vector<1x16x128xbf16>
      %54 = vector.shape_cast %53 : vector<1x16x128xbf16> to vector<16x128xbf16>
      %c2_51 = arith.constant 2 : index
      %c0_52 = arith.constant 0 : index
      %c0_53 = arith.constant 0 : index
      %55 = vector.load %arg4[%c2_51, %c0_52, %c0_53] : memref<3x128x128xbf16, #tpu.memory_space<vmem>>, vector<1x128x128xbf16>
      %56 = vector.shape_cast %55 : vector<1x128x128xbf16> to vector<128x128xbf16>
      %cst_54 = arith.constant dense<0.000000e+00> : vector<16x128xf32>
      %57 = tpu.matmul %54, %56, %cst_54 {dimension_numbers = #tpu.dot_dimension_numbers<[1], [0], [0], [1], [0, 0, 1, 1], [], []>} : vector<16x128xbf16>, vector<128x128xbf16>, vector<16x128xf32> -> vector<16x128xf32>
      %58 = arith.addf %52, %57 : vector<16x128xf32>
      %c1_55 = arith.constant 1 : index
      %c0_56 = arith.constant 0 : index
      %59 = vector.load %arg5[%c1_55, %c0_56] : memref<3x128xf32, #tpu.memory_space<vmem>>, vector<1x128xf32>
      %60 = vector.broadcast %59 : vector<1x128xf32> to vector<16x128xf32>
      %61 = arith.addf %58, %60 : vector<16x128xf32>
      %62 = vector.shape_cast %61 : vector<16x128xf32> to vector<1x16x128xf32>
      %c0_57 = arith.constant 0 : index
      %c1_58 = arith.constant 1 : index
      %c0_59 = arith.constant 0 : index
      %63 = vector.load %arg2[%c0_57, %c1_58, %c0_59] : memref<1x18x128xbf16, #tpu.memory_space<vmem>>, vector<1x16x128xbf16>
      %64 = vector.shape_cast %63 : vector<1x16x128xbf16> to vector<16x128xbf16>
      %65 = arith.extf %64 : vector<16x128xbf16> to vector<16x128xf32>
      %66 = vector.shape_cast %65 : vector<16x128xf32> to vector<1x16x128xf32>
      %c0_i32_60 = arith.constant 0 : i32
      %67 = arith.addi %0, %c0_i32_60 : i32
      %68 = arith.index_cast %67 : i32 to index
      %69 = memref.load %arg1[%68] : memref<2xi32, #tpu.memory_space<smem>>
      %c0_i32_61 = arith.constant 0 : i32
      %70 = arith.cmpi ne, %69, %c0_i32_61 : i32
      %71 = arith.extui %70 : i1 to i32
      %72 = arith.sitofp %71 : i32 to f32
      %73 = vector.shape_cast %66 : vector<1x16x128xf32> to vector<16x128xf32>
      %74 = vector.shape_cast %62 : vector<1x16x128xf32> to vector<16x128xf32>
      %75 = vector.broadcast %72 : f32 to vector<16x128xf32>
      %76 = arith.mulf %74, %75 : vector<16x128xf32>
      %77 = arith.addf %73, %76 : vector<16x128xf32>
      %cst_62 = arith.constant 0.000000e+00 : f32
      %78 = vector.broadcast %cst_62 : f32 to vector<16x128xf32>
      %79 = arith.maximumf %77, %78 : vector<16x128xf32>
      %80 = arith.truncf %79 : vector<16x128xf32> to vector<16x128xbf16>
      %c0_63 = arith.constant 0 : index
      %c0_64 = arith.constant 0 : index
      %c0_65 = arith.constant 0 : index
      %81 = vector.load %arg6[%c0_63, %c0_64, %c0_65] : memref<1x16x128xbf16, #tpu.memory_space<vmem>>, vector<1x16x128xbf16>
      %82 = vector.shape_cast %81 : vector<1x16x128xbf16> to vector<16x128xbf16>
      %83 = vector.shape_cast %80 : vector<16x128xbf16> to vector<1x16x128xbf16>
      tpu.vector_store %arg6[%c0_63, %c0_64, %c0_65], %83 {strides = array<i32>} : memref<1x16x128xbf16, #tpu.memory_space<vmem>>, vector<1x16x128xbf16>,
    } else {
    }
    %true = arith.constant true
    %6 = arith.xori %3, %true : i1
    %7 = arith.extui %6 : i1 to i32
    %c0_i32_1 = arith.constant 0 : i32
    %8 = arith.cmpi ne, %7, %c0_i32_1 : i32
    scf.if %8 {
      %c0 = arith.constant 0 : index
      %c1 = arith.constant 1 : index
      %c0_2 = arith.constant 0 : index
      %9 = vector.load %arg2[%c0, %c1, %c0_2] : memref<1x18x128xbf16, #tpu.memory_space<vmem>>, vector<1x16x128xbf16>
      %10 = vector.shape_cast %9 : vector<1x16x128xbf16> to vector<16x128xbf16>
      %11 = arith.extf %10 : vector<16x128xbf16> to vector<16x128xf32>
      %12 = vector.shape_cast %11 : vector<16x128xf32> to vector<1x16x128xf32>
      %cst = arith.constant 0.000000e+00 : f32
      %13 = vector.broadcast %cst : f32 to vector<1x16x128xf32>
      %14 = arith.maximumf %12, %13 : vector<1x16x128xf32>
      %15 = arith.truncf %14 : vector<1x16x128xf32> to vector<1x16x128xbf16>
      %c0_3 = arith.constant 0 : index
      %c0_4 = arith.constant 0 : index
      %c0_5 = arith.constant 0 : index
      %16 = vector.load %arg6[%c0_3, %c0_4, %c0_5] : memref<1x16x128xbf16, #tpu.memory_space<vmem>>, vector<1x16x128xbf16>
      tpu.vector_store %arg6[%c0_3, %c0_4, %c0_5], %15 {strides = array<i32>} : memref<1x16x128xbf16, #tpu.memory_space<vmem>>, vector<1x16x128xbf16>,
    } else {
    }
    return
  }
  func.func @transform_0(%arg0: i32, %arg1: memref<2xi32, #tpu.memory_space<smem>>) -> (i32, i32, i32) {
    %c0_i32 = arith.constant 0 : i32
    %c0_i32_0 = arith.constant 0 : i32
    %c0_i32_1 = arith.constant 0 : i32
    return %arg0, %c0_i32, %c0_i32_0 : i32, i32, i32
  }
  func.func @transform_1(%arg0: i32, %arg1: memref<2xi32, #tpu.memory_space<smem>>) -> (i32, i32, i32) {
    %c0_i32 = arith.constant 0 : i32
    %c0_i32_0 = arith.constant 0 : i32
    %c0_i32_1 = arith.constant 0 : i32
    %c0_i32_2 = arith.constant 0 : i32
    return %c0_i32, %c0_i32_0, %c0_i32_1 : i32, i32, i32
  }
  func.func @transform_2(%arg0: i32, %arg1: memref<2xi32, #tpu.memory_space<smem>>) -> (i32, i32, i32) {
    %c0_i32 = arith.constant 0 : i32
    %c0_i32_0 = arith.constant 0 : i32
    %c0_i32_1 = arith.constant 0 : i32
    %c0_i32_2 = arith.constant 0 : i32
    return %c0_i32, %c0_i32_0, %c0_i32_1 : i32, i32, i32
  }
  func.func @transform_3(%arg0: i32, %arg1: memref<2xi32, #tpu.memory_space<smem>>) -> (i32, i32) {
    %c0_i32 = arith.constant 0 : i32
    %c0_i32_0 = arith.constant 0 : i32
    %c0_i32_1 = arith.constant 0 : i32
    return %c0_i32, %c0_i32_0 : i32, i32
  }
  func.func @transform_4(%arg0: i32, %arg1: memref<2xi32, #tpu.memory_space<smem>>) -> (i32, i32, i32) {
    %c0_i32 = arith.constant 0 : i32
    %c0_i32_0 = arith.constant 0 : i32
    %c0_i32_1 = arith.constant 0 : i32
    return %arg0, %c0_i32, %c0_i32_0 : i32, i32, i32
  }
}

</mosaic_0001>

<bundles_post_ra>
// kernel: tpu_custom_call.1
= control target key start
LH: loop header
LB: loop body
LE: loop exit
PB: predicated region body
PF: predicated region fallthrough
CT: control target
= control target key end

     0   :  { %s1546_s21 = smov [#allocation4]   ;;  %s1754_s0 = inlined_call_operand.vmem [shape: s32[2], index: 0, kind: input, shape index: {}]   ;;  %s1755_s1 = inlined_call_operand.vmem [shape: bf16[2,18,128], index: 1, kind: input, shape index: {}]   ;;  %s1756_s2 = inlined_call_operand.hbm [shape: bf16[3,128,128], index: 2, kind: input, shape index: {}]   ;;  %s1757_s3 = inlined_call_operand.hbm [shape: bf16[3,128,128], index: 3, kind: input, shape index: {}]   ;;  %s1758_s4 = inlined_call_operand.vmem [shape: f32[3,128], index: 4, kind: input, shape index: {}]   ;;  %s1759_s5 = inlined_call_operand.hbm [shape: bf16[2,16,128], index: 5, kind: output, shape index: {}]  }
   0x1   :  { %s11_s20 = sshll.u32 %s1754_s0, 4  ;;  %s12_s20 = int_to_ptr.vmem [resolvable:$true] %s11_s20 }
   0x2   :  { %14 = dma.vmem_to_smem %s12_s20, 16, %s1546_s21, [#allocation3] }
   0x3   :  { %1516 = dma.done.wait [#allocation3], 16 }
   0x4   :  { %1517 = vsyncadd [#allocation3], 4294967280 }
   0x5   :  { %17 = sfence }
   0x6   :  { %18 = vsyncpa [#allocation6], 0 }
   0x7   :  { %19 = vsyncpa [#allocation9], 0 }
   0x8   :  { %20 = vsyncpa [#allocation7], 0 }
   0x9   :  { %22 = vsyncpa [#allocation7 + $0x1], 0  ;;  %s1586_s22 = smov 0   ;;  %s1588_s23 = smov 0  }
   0xa   :  { %s1590_s24 = smov 0   ;;  %s1592_s25 = smov 0  }
   0xb LB: > { %s1607_s0 = sadd.s32 4294967295, %s1544_s25   ;;  %s1052_s26 = sadd.s32 4294967294, %s1544_s25   ;;  %s1544_s25 = sphi %s1592_s25, %s1768_s25   ;;  %s1540_s24 = sphi %s1590_s24, %s1767_s24   ;;  %s1536_s23 = sphi %s1588_s23, %s1766_s23   ;;  %s1532_s22 = sphi %s1586_s22, %s1765_s22  }
   0xc   : > { %s1611_s27 = sadd.s32 1, %s1544_s25   ;;  %s124_s28 = sadd.s32 1, %s1540_s24 }
   0xd   : > { %s121_s29 = ssub.s32 %s1544_s25, %s1611_s27  ;;  %p134_p0 = scmp.ne.s32.totalorder %s1540_s24, %s1536_s23 }
   0xe   : > { %p122_p1 = scmp.eq.s32.totalorder %s121_s29, 0  ;;  %p135_p2 = scmp.eq.s32.totalorder %s1607_s0, 1 }
   0xf   : > { %p140_p3 = scmp.ne.s32.totalorder %s1536_s23, %s1532_s22  ;;  %p141_p4 = scmp.eq.s32.totalorder %s1052_s26, 1 }
  0x10   : > { %s1622_s30 = scalar_select %p122_p1, %s1540_s24, %s124_s28  }
  0x11   : > { %p1624_p5 = por %p135_p2, %p134_p0  ;;  %p1628_p6 = por %p141_p4, %p140_p3 }
  0x12   : > { %p1053_p7 = scmp.ge.s32.totalorder %s1544_s25, 1  ;;  %p148_p8 = scmp.lt.s32.totalorder %s1544_s25, 3 }
  0x13   : > { %p1354_p9 = scmp.eq.s32.totalorder %s1607_s0, 0  ;;  %s159_s11 = sshll.u32 %s1756_s2, 4  ;;  %s160_s11 = int_to_ptr.hbm [resolvable:$true] %s159_s11 }
  0x14   : > { %p1635_p10 = pnand %p1053_p7, %p148_p8  ;;  %s1547_s12 = smov [#allocation5]  }
  0x15   : > { %s161_s13 = sshll.u32 %s1547_s12, 4  ;;  %s173_s16 = sshll.u32 %s1757_s3, 4  ;;  %s162_s13 = int_to_ptr.vmem [resolvable:$true] %s161_s13  ;;  %s174_s16 = int_to_ptr.hbm [resolvable:$true] %s173_s16 }
  0x16   : > { %p1343_p11 = pneg %p1635_p10  ;;  %s1548_s17 = smov 64  }
  0x17   : > { %s1549_s18 = smov 4   ;;  %s1550_s19 = smov [#allocation8]  }
  0x18   : > { %p1344_p12 = pnand %p1354_p9, %p1343_p11  ;;  %s175_s20 = sshll.u32 %s1550_s19, 4  ;;  %s176_s20 = int_to_ptr.vmem [resolvable:$true] %s175_s20 }
  0x19   : > { %202 = sbr.rel (%p1635_p10) target bundleno = 462 (0x1ce), region = 36 }
  0x1a   : > { %1346 = dma.hbm_to_vmem [thread:$0]  (!%p1344_p12), %s160_s11, 3072, %s162_s13, [#allocation6], %s1548_s17, %s1548_s17, %s1549_s18  }
  0x1b   : > { %1349 = dma.hbm_to_vmem [thread:$0]  (!%p1344_p12), %s174_s16, 3072, %s176_s20, [#allocation9], %s1548_s17, %s1548_s17, %s1549_s18  }
  0x1e   : > { %1519 = dma.done.wait (%p1354_p9), [#allocation6], 3072  }
  0x1f   : > { %1521 = vsyncadd (%p1354_p9), [#allocation6], 4294964224 }
  0x20   : > { %1523 = dma.done.wait (%p1354_p9), [#allocation9], 3072  }
  0x21   : > { %1525 = vsyncadd (%p1354_p9), [#allocation9], 4294964224  ;;  %s231_s21 = sand.u32 1, %s1536_s23   ;;  %p234_p13 = scmp.lt.s32.totalorder %s1607_s0, 1 }
  0x22   : > { %s1662_s26 = sld [smem:[#allocation4 + %s1607_s0]]  ;;  %s1060_s28 = sshll.u32 %s231_s21, 3 }
  0x23   : > { %s235_s29 = scalar_select %p234_p13, %s1607_s0, 1 }
  0x24   : > { %s1672_s12 = scalar_lea.vmem [#allocation10], %s1060_s28 }
  0x25   : > { %s1332_s8 = smul.u32 12, %s235_s29 }
  0x27   : > { %s1670_s11 = scalar_lea.vmem %s1755_s1, %s1332_s8 }
  0x28   : > { %p1062_p0 = scmp.eq.s32.totalorder %s1662_s26, 0 }
  0x29   : > { %s849_s15 = sld [smem:[#allocation4 + %s1607_s0]] (!%p1062_p0) }
  0x2a   : > { %244 = sbr.rel (%p1062_p0) target bundleno = 421 (0x1a5), region = 48 }
  0x2f   : > { %v1276_v0 = vld [vmem:[#allocation5 + $0x78] sm:$0xff]  ;;  %v1275_v3 = vld [vmem:[#allocation5 + $0x70] sm:$0xff]  ;;  %v1274_v6 = vld [vmem:[#allocation5 + $0x68] sm:$0xff]  ;;  %vm289_vm0 = vsmask.f32 7424  ;;  %vm449_vm1 = vcmask 1046528  }
  0x30   : > { %v1268_v1 = vld [vmem:[#allocation5 + $0x38] sm:$0xff]  ;;  %351 = vmatpush.bf16.msra.mxu0 %v1276_v0  ;;  %v1267_v4 = vld [vmem:[#allocation5 + $0x30] sm:$0xff]  ;;  %v1266_v7 = vld [vmem:[#allocation5 + $0x28] sm:$0xff]  ;;  %vm524_vm2 = vcmask 1040384   ;;  %vm525_vm3 = vsmask.f32 256 }
  0x31   : > { %v1284_v2 = vld [vmem:[#allocation5 + $0xb8] sm:$0xff]  ;;  %414 = vmatpush.bf16.msra.mxu1 %v1268_v1  ;;  %v1283_v5 = vld [vmem:[#allocation5 + $0xb0] sm:$0xff]  ;;  %v1282_v8 = vld [vmem:[#allocation5 + $0xa8] sm:$0xff]  ;;  %vm530_vm5 = vsmask.f32 7938  ;;  %vm559_vm7 = vcmask 1043456  }
  0x32   : > { %502 = vmatpush.bf16.msra.mxu2 %v1284_v2  ;;  %v1273_v9 = vld [vmem:[#allocation5 + $0x60] sm:$0xff]  ;;  %v263_v12 = vld [vmem:[%s1670_s11 + $0x8] sm:$0x1]  ;;  %v1677_v17 = vld [vmem:[%s1670_s11] sm:$0xff]   ;;  %vm537_vm9 = vsmask.f32 4368 }
  0x33   : > { %v1265_v10 = vld [vmem:[#allocation5 + $0x20] sm:$0xff]  ;;  %v1272_v13 = vld [vmem:[#allocation5 + $0x58] sm:$0xff]  ;;  %v286_v15 = vunpack.c.l.b16 %v263_v12  ;;  %v1271_v18 = vld [vmem:[#allocation5 + $0x50] sm:$0xff]  ;;  %v293_v21 = vshll.u32 %v1677_v17, 16  ;;  %v291_v27 = vshrl.u32 %v1677_v17, 16  ;;  %p850_p1 = scmp.ne.s32.totalorder %s849_s15, 0 }
  0x34   : > { %352 = vmatpush.bf16.msra.mxu0 %v1275_v3  ;;  %v1281_v11 = vld [vmem:[#allocation5 + $0xa0] sm:$0xff]  ;;  %v1264_v14 = vld [vmem:[#allocation5 + $0x18] sm:$0xff]  ;;  %v1263_v19 = vld [vmem:[#allocation5 + $0x10] sm:$0xff]  ;;  %vm874_vm11 = vsmask.f32 3328 }
  0x35   : > { %415 = vmatpush.bf16.msra.mxu1 %v1267_v4  ;;  %v1280_v16 = vld [vmem:[#allocation5 + $0x98] sm:$0xff]  ;;  %v288_v20 = vpack.c.b16 %v286_v15, %v286_v15  ;;  %v1279_v22 = vld [vmem:[#allocation5 + $0x90] sm:$0xff]  ;;  %v1270_v25 = vld [vmem:[#allocation5 + $0x48] sm:$0xff]  ;;  %v295_v28 = vrot.slane %v293_v21, 1  ;;  %s851_s16 = scalar_select %p850_p1, 1, 0 }
  0x36   : > { %503 = vmatpush.bf16.msra.mxu2 %v1283_v5  ;;  %v1326_v23 = vld [vmem:[%s1670_s11] sm:$0xf0]  ;;  %v1327_v24 = vld [vmem:[%s1670_s11] sm:$0xe]  ;;  %v1262_v26 = vld [vmem:[#allocation5 + $0x8] sm:$0xff] }
  0x37   : > { %v298_v29 = vshll.u32 %v288_v20, 16  ;;  %v1278_v30 = vld [vmem:[#allocation5 + $0x88] sm:$0xff]  ;;  %v1328_v31 = vor.u32 %v1327_v24, %v1326_v23  ;;  %v1269_v32 = vld [vmem:[#allocation5 + $0x40] sm:$0xff]  ;;  %v296_v34 = vor.u32 %v295_v28, %v291_v27  ;;  %v451_v38 = vrot.slane %v288_v20, 1  ;;  %v1292_v41 = vld [vmem:[#allocation8 + $0x38] sm:$0xff]  ;;  %s852_s17 = scvt.s32.f32 %s851_s16 }
  0x38   : > { %353 = vmatpush.bf16.msra.mxu0 %v1274_v6  ;;  %v1261_v33 = vld [vmem:[#allocation5] sm:$0xff]  ;;  %v1291_v42 = vld [vmem:[#allocation8 + $0x30] sm:$0xff]  ;;  %vm1688_vm4 = vmand %vm524_vm2, %vm525_vm3  ;;  %vm875_vm12 = vsmask.f32 7440 }
  0x39   : > { %416 = vmatpush.bf16.msra.mxu1 %v1266_v7  ;;  %v300_v35 = vrot.slane %v298_v29, 1  ;;  %v1277_v36 = vld [vmem:[#allocation5 + $0x80] sm:$0xff]  ;;  %v450_v37 = vrot.slane %v1328_v31, 1  ;;  %v527_v44 = vld [vmem:[#allocation2] sm:$0x1]  ;;  %vm531_vm6 = vmand %vm524_vm2, %vm530_vm5 }
  0x3a   : > { %504 = vmatpush.bf16.msra.mxu2 %v1282_v8  ;;  %v532_v45 = vld [vmem:[#allocation2 + $0x8] sm:$0x1]  ;;  %v528_v46 = vsel %vm1688_vm4, 0, %v527_v44  ;;  %v1290_v49 = vld [vmem:[#allocation8 + $0x28] sm:$0xff]  ;;  %v1307_v51 = vld [vmem:[#allocation8 + $0xb0] sm:$0xff] }
  0x3b   : > { %v301_v39 = vsel %vm289_vm0, %v296_v34, %v300_v35  ;;  %v452_v40 = vsel %vm449_vm1, %v450_v37, %v451_v38  ;;  %529 = vst [vmem:[#allocation2] sm:$0x1] %v528_v46  ;;  %v533_v47 = vsel %vm531_vm6, 0, %v532_v45  ;;  %v1308_v48 = vld [vmem:[#allocation8 + $0xb8] sm:$0xff]  ;;  %v1289_v52 = vld [vmem:[#allocation8 + $0x20] sm:$0xff]  ;;  %v1299_v53 = vld [vmem:[#allocation8 + $0x70] sm:$0xff] }
  0x3c   : > { %354 = vmatpush.bf16.msra.mxu0 %v1273_v9  ;;  %534 = vst [vmem:[#allocation2 + $0x8] sm:$0x1] %v533_v47  ;;  %v1300_v50 = vld [vmem:[#allocation8 + $0x78] sm:$0xff]  ;;  %v1306_v54 = vld [vmem:[#allocation8 + $0xa8] sm:$0xff]  ;;  %v1305_v57 = vld [vmem:[#allocation8 + $0xa0] sm:$0xff] }
  0x3d   : > { %417 = vmatpush.bf16.msra.mxu1 %v1265_v10  ;;  %673 = vmatpush.bf16.msra.mxu3 %v1300_v50  ;;  %v1288_v55 = vld [vmem:[#allocation8 + $0x18] sm:$0xff]  ;;  %v1298_v56 = vld [vmem:[#allocation8 + $0x68] sm:$0xff]  ;;  %v1287_v58 = vld [vmem:[#allocation8 + $0x10] sm:$0xff] }
  0x3e   : > { %505 = vmatpush.bf16.msra.mxu2 %v1281_v11  ;;  %v1297_v59 = vld [vmem:[#allocation8 + $0x60] sm:$0xff]  ;;  %v1304_v60 = vld [vmem:[#allocation8 + $0x98] sm:$0xff]  ;;  %v1286_v61 = vld [vmem:[#allocation8 + $0x8] sm:$0xff] }
  0x3f   : > { %v1296_v62 = vld [vmem:[#allocation8 + $0x58] sm:$0xff]  ;;  %v1303_v63 = vld [vmem:[#allocation8 + $0x90] sm:$0xff]  ;;  %v1285_v2 = vld [vmem:[#allocation8] sm:$0xff] }
  0x40   : > { %355 = vmatpush.bf16.msra.mxu0 %v1272_v13  ;;  %v1295_v3 = vld [vmem:[#allocation8 + $0x50] sm:$0xff]  ;;  %v1302_v6 = vld [vmem:[#allocation8 + $0x88] sm:$0xff]  ;;  %v1301_v10 = vld [vmem:[#allocation8 + $0x80] sm:$0xff] }
  0x41   : > { %418 = vmatpush.bf16.msra.mxu1 %v1264_v14  ;;  %674 = vmatpush.bf16.msra.mxu3 %v1299_v53  ;;  %v1398_v5 = vld [vmem:[%s1758_s4] ss:$0 sm:$0xff]  ;;  %v1294_v9 = vld [vmem:[#allocation8 + $0x48] sm:$0xff]  ;;  %v1293_v12 = vld [vmem:[#allocation8 + $0x40] sm:$0xff] }
  0x42   : > { %506 = vmatpush.bf16.msra.mxu2 %v1280_v16  ;;  %vm560_vm8 = vmand %vm559_vm7, %vm530_vm5 }
  0x43   : > { %vm538_vm10 = vmor %vm525_vm3, %vm537_vm9 }
  0x44   : > { %356 = vmatpush.bf16.msra.mxu0 %v1271_v18  ;;  %vm876_vm13 = vmor %vm874_vm11, %vm875_vm12 }
  0x45   : > { %419 = vmatpush.bf16.msra.mxu1 %v1263_v19  ;;  %675 = vmatpush.bf16.msra.mxu3 %v1298_v56 }
  0x46   : > { %507 = vmatpush.bf16.msra.mxu2 %v1279_v22 }
  0x48   : > { %357 = vmatpush.bf16.msra.mxu0 %v1270_v25  ;;  %v561_v25 = vld [vmem:[#allocation2] sm:$0xf] }
  0x49   : > { %420 = vmatpush.bf16.msra.mxu1 %v1262_v26  ;;  %676 = vmatpush.bf16.msra.mxu3 %v1297_v59 }
  0x4a   : > { %508 = vmatpush.bf16.msra.mxu2 %v1278_v30 }
  0x4c   : > { %358 = vmatpush.bf16.msra.mxu0 %v1269_v32 }
  0x4d   : > { %421 = vmatpush.bf16.msra.mxu1 %v1261_v33  ;;  %677 = vmatpush.bf16.msra.mxu3 %v1296_v62  ;;  %v565_v33 = vld [vmem:[#allocation2 + $0x8] sm:$0x1]  ;;  %v853_v62 = vstv %s852_s17 }
  0x4e   : > { %509 = vmatpush.bf16.msra.mxu2 %v1277_v36 }
  0x4f   : > { %359 = vmatmul.bf16.vlgmr.msra.gmra.mxu0 %v301_v39 }
  0x50   : > { %422 = vmatmul.bf16.vlgmr.msra.gmra.mxu1 %v1677_v17  ;;  %736 = vmatpush.bf16.msrb.mxu0 %v1292_v41 }
  0x51   : > { %510 = vmatmul.bf16.vlgmr.msra.gmra.mxu2 %v452_v40  ;;  %823 = vmatpush.bf16.msrb.mxu1 %v1308_v48 }
  0x52   : > { %678 = vmatpush.bf16.msra.mxu3 %v1295_v3 }
  0x54   : > { %737 = vmatpush.bf16.msrb.mxu0 %v1291_v42 }
  0x55   : > { %824 = vmatpush.bf16.msrb.mxu1 %v1307_v51 }
  0x56   : > { %679 = vmatpush.bf16.msra.mxu3 %v1294_v9  ;;  %v845_v9 = vld [vmem:[%s1670_s11 + $0x8] sm:$0x1] }
  0x58   : > { %738 = vmatpush.bf16.msrb.mxu0 %v1290_v49 }
  0x59   : > { %825 = vmatpush.bf16.msrb.mxu1 %v1306_v54 }
  0x5a   : > { %680 = vmatpush.bf16.msra.mxu3 %v1293_v12 }
  0x5c   : > { %739 = vmatpush.bf16.msrb.mxu0 %v1289_v52 }
  0x5d   : > { %826 = vmatpush.bf16.msrb.mxu1 %v1305_v57 }
  0x60   : > { %740 = vmatpush.bf16.msrb.mxu0 %v1288_v55 }
  0x61   : > { %827 = vmatpush.bf16.msrb.mxu1 %v1304_v60  ;;  %v1399_v60 = vld [vmem:[%s1758_s4 + $0x1] ss:$0 sm:$0xff] }
  0x64   : > { %741 = vmatpush.bf16.msrb.mxu0 %v1287_v58 }
  0x65   : > { %828 = vmatpush.bf16.msrb.mxu1 %v1303_v63 }
  0x68   : > { %742 = vmatpush.bf16.msrb.mxu0 %v1286_v61 }
  0x69   : > { %829 = vmatpush.bf16.msrb.mxu1 %v1302_v6 }
  0x6c   : > { %743 = vmatpush.bf16.msrb.mxu0 %v1285_v2 }
  0x6d   : > { %830 = vmatpush.bf16.msrb.mxu1 %v1301_v10 }
  0xcc   : > { %v360_v0 = vpop.f32.mrf.mxu0 }
  0xcd   : > { %v423_v1 = vpop.f32.mrf.mxu1 }
  0xce   : > { %v424_v4 = vadd.f32 %v423_v1, %v360_v0  ;;  %v1320_v0 = vunpack.c.l.bf16 %v1677_v17 }
  0xd4   : > { %v511_v7 = vpop.f32.mrf.mxu2  ;;  %v362_v13 = vpop.f32.mrf.mxu0 }
  0xd5   : > { %v516_v8 = vadd.f32 %v511_v7, %v424_v4  ;;  %v425_v14 = vpop.f32.mrf.mxu1 }
  0xd6   : > { %v426_v18 = vadd.f32 %v425_v14, %v362_v13  ;;  %v848_v13 = vunpack.c.l.bf16 %v845_v9 }
  0xd7   : > { %v520_v11 = vadd.f32 %v1398_v5, %v516_v8 }
  0xd9   : > { %v522_v15 = vmax.f32 %v520_v11, 0.0 }
  0xdb   : > { %v535_v16 = vpack.c.bf16 %v522_v15, %v522_v15  ;;  %v1321_v15 = vunpack.c.h.bf16 %v1677_v17 }
  0xdc   : > { %v513_v19 = vpop.f32.mrf.mxu2 }
  0xdd   : > { %v540_v20 = vshrl.u32 %v535_v16, 16  ;;  %v517_v21 = vadd.f32 %v513_v19, %v426_v18  ;;  %v543_v23 = vshll.u32 %v535_v16, 16 }
  0xdf   : > { %v542_v22 = vrot.slane %v540_v20, 7  ;;  %v521_v24 = vadd.f32 %v1398_v5, %v517_v21 }
  0xe1   : > { %v545_v26 = vor.u32 %v543_v23, %v542_v22  ;;  %v523_v27 = vmax.f32 %v521_v24, 0.0  ;;  %v546_v34 = vrot.slane %v542_v22, 4 }
  0xe3   : > { %v562_v28 = vsel %vm560_vm8, %v545_v26, %v561_v25  ;;  %v536_v29 = vpack.c.bf16 %v523_v27, %v523_v27 }
  0xe4   : > { %563 = vst [vmem:[#allocation2] sm:$0xf] %v562_v28 }
  0xe5   : > { %v548_v30 = vshrl.u32 %v536_v29, 16  ;;  %v551_v32 = vshll.u32 %v536_v29, 16 }
  0xe7   : > { %v550_v31 = vrot.slane %v548_v30, 7 }
  0xe9   : > { %v553_v35 = vor.u32 %v551_v32, %v550_v31  ;;  %v555_v36 = vrot.slane %v550_v31, 4 }
  0xeb   : > { %v554_v37 = vsel %vm538_vm10, %v546_v34, %v553_v35  ;;  %v566_v38 = vsel %vm1688_vm4, %v555_v36, %v565_v33  ;;  %v1330_v44 = vld [vmem:[#allocation2] sm:$0xe] }
  0xec   : > { %564 = vst [vmem:[#allocation2 + $0x4] sm:$0xf] %v554_v37 }
  0xed   : > { %567 = vst [vmem:[#allocation2 + $0x8] sm:$0x1] %v566_v38 }
  0xf3   : > { %v1315_v39 = vld [vmem:[#allocation2] sm:$0xff]  }
  0xf4   : > { %v1329_v40 = vld [vmem:[#allocation2] sm:$0xf0]  ;;  %v615_v41 = vshll.u32 %v1315_v39, 16  ;;  %744 = vmatmul.bf16.vlgmr.msrb.gmra.mxu0 %v1315_v39  ;;  %v586_v42 = vld [vmem:[#allocation2 + $0x8] sm:$0x1]  ;;  %v613_v49 = vshrl.u32 %v1315_v39, 16 }
  0xf5   : > { %v609_v45 = vunpack.c.l.b16 %v586_v42  ;;  %v1331_v46 = vor.u32 %v1330_v44, %v1329_v40 }
  0xf6   : > { %v617_v47 = vrot.slane %v615_v41, 1 }
  0xf7   : > { %v611_v48 = vpack.c.b16 %v609_v45, %v609_v45  ;;  %v771_v50 = vrot.slane %v1331_v46, 1 }
  0xf8   : > { %v618_v53 = vor.u32 %v617_v47, %v613_v49 }
  0xf9   : > { %v772_v51 = vrot.slane %v611_v48, 1  ;;  %v620_v52 = vshll.u32 %v611_v48, 16 }
  0xfb   : > { %v773_v43 = vsel %vm449_vm1, %v771_v50, %v772_v51  ;;  %v622_v54 = vrot.slane %v620_v52, 1 }
  0xfc   : > { %831 = vmatmul.bf16.vlgmr.msrb.gmra.mxu1 %v773_v43 }
  0xfd   : > { %v623_v55 = vsel %vm289_vm0, %v618_v53, %v622_v54 }
  0xfe   : > { %681 = vmatmul.bf16.vlgmr.msra.gmra.mxu3 %v623_v55 }
 0x171   : > { %v745_v56 = vpop.f32.mrf.mxu0 }
 0x179   : > { %v832_v57 = vpop.f32.mrf.mxu1  ;;  %v747_v2 = vpop.f32.mrf.mxu0 }
 0x181   : > { %v682_v58 = vpop.f32.mrf.mxu3  ;;  %v834_v6 = vpop.f32.mrf.mxu1 }
 0x182   : > { %v746_v59 = vadd.f32 %v745_v56, %v682_v58 }
 0x184   : > { %v837_v61 = vadd.f32 %v832_v57, %v746_v59 }
 0x186   : > { %v841_v63 = vadd.f32 %v1399_v60, %v837_v61 }
 0x188   : > { %v854_v1 = vmul.f32 %v853_v62, %v841_v63 }
 0x189   : > { %v684_v3 = vpop.f32.mrf.mxu3 }
 0x18a   : > { %v859_v4 = vrot.slane %v854_v1, 7  ;;  %v748_v5 = vadd.f32 %v747_v2, %v684_v3 }
 0x18c   : > { %v865_v7 = vadd.f32 %v1320_v0, %v859_v4  ;;  %v838_v8 = vadd.f32 %v834_v6, %v748_v5 }
 0x18e   : > { %v868_v10 = vmax.f32 %v865_v7, 0.0  ;;  %v842_v11 = vadd.f32 %v1399_v60, %v838_v8 }
 0x190   : > { %v871_v12 = vpack.c.bf16 %v868_v10, %v868_v10  ;;  %v855_v14 = vmul.f32 %v853_v62, %v842_v11 }
 0x192   : > { %v878_v16 = vshrl.u32 %v871_v12, 16  ;;  %v881_v18 = vshll.u32 %v871_v12, 16  ;;  %v860_v19 = vrot.slane %v855_v14, 7 }
 0x194   : > { %v861_v20 = vsel %vm524_vm2, %v859_v4, %v860_v19  ;;  %v867_v21 = vadd.f32 %v860_v19, %v848_v13  ;;  %v880_v22 = vrot.slane %v878_v16, 4  ;;  %v883_v23 = vrot.slane %v881_v18, 5 }
 0x195   : > { %v866_v24 = vadd.f32 %v1321_v15, %v861_v20 }
 0x196   : > { %v870_v25 = vmax.f32 %v867_v21, 0.0  ;;  %v884_v27 = vor.u32 %v883_v23, %v880_v22 }
 0x197   : > { %v869_v26 = vmax.f32 %v866_v24, 0.0 }
 0x198   : > { %v873_v29 = vpack.c.bf16 %v870_v25, %v870_v25  ;;  %v885_v31 = vrot.slane %v884_v27, 4 }
 0x199   : > { %v872_v28 = vpack.c.bf16 %v869_v26, %v869_v26 }
 0x19a   : > { %v897_v34 = vshll.u32 %v873_v29, 16 }
 0x19b   : > { %v887_v30 = vshll.u32 %v872_v28, 16  ;;  %v891_v17 = vshrl.u32 %v872_v28, 16 }
 0x19c   : > { %v899_v38 = vrot.slane %v897_v34, 5 }
 0x19d   : > { %v889_v32 = vrot.slane %v887_v30, 5  ;;  %v893_v33 = vrot.slane %v891_v17, 4 }
 0x19f   : > { %v890_v35 = vsel %vm876_vm13, %v885_v31, %v889_v32  ;;  %v894_v36 = vor.u32 %v893_v33, %v889_v32 }
 0x1a0   : > { %903 = vst [vmem:[%s1672_s12] sm:$0xf] %v890_v35 }
 0x1a1   : > { %v895_v37 = vrot.slane %v894_v36, 4 }
 0x1a3   : > { %v900_v39 = vsel %vm876_vm13, %v895_v37, %v899_v38 }
 0x1a4   : > { %904 = vst [vmem:[%s1672_s12 + $0x4] sm:$0xf] %v900_v39 }
 0x1a5 PF: > { %p1255_p2 = scmp.ne.s32.totalorder %s1662_s26, 0 }
 0x1a7   : > { %908 = sbr.rel (%p1255_p2) target bundleno = 446 (0x1be), region = 52 }
 0x1ac   : > { %v1323_v40 = vld [vmem:[%s1670_s11] sm:$0xff]   ;;  %v911_v44 = vld [vmem:[%s1670_s11 + $0x8] sm:$0x1]  ;;  %vm921_vm14 = vsmask.f32 3328 }
 0x1ad   : > { %v1324_v41 = vunpack.c.l.bf16 %v1323_v40  ;;  %v1325_v42 = vunpack.c.h.bf16 %v1323_v40  ;;  %v914_v45 = vunpack.c.l.bf16 %v911_v44  ;;  %vm922_vm15 = vsmask.f32 7440 }
 0x1ae   : > { %vm923_vm0 = vmor %vm921_vm14, %vm922_vm15 }
 0x1af   : > { %v915_v46 = vmax.f32 %v1324_v41, 0.0  ;;  %v916_v47 = vmax.f32 %v1325_v42, 0.0  ;;  %v917_v48 = vmax.f32 %v914_v45, 0.0 }
 0x1b1   : > { %v918_v49 = vpack.c.bf16 %v915_v46, %v915_v46  ;;  %v919_v50 = vpack.c.bf16 %v916_v47, %v916_v47  ;;  %v920_v51 = vpack.c.bf16 %v917_v48, %v917_v48 }
 0x1b3   : > { %v925_v52 = vshrl.u32 %v918_v49, 16  ;;  %v928_v43 = vshll.u32 %v918_v49, 16  ;;  %v934_v53 = vshll.u32 %v919_v50, 16  ;;  %v938_v54 = vshrl.u32 %v919_v50, 16 }
 0x1b4   : > { %v944_v55 = vshll.u32 %v920_v51, 16 }
 0x1b5   : > { %v927_v56 = vrot.slane %v925_v52, 4  ;;  %v930_v57 = vrot.slane %v928_v43, 5  ;;  %v936_v58 = vrot.slane %v934_v53, 5  ;;  %v940_v59 = vrot.slane %v938_v54, 4 }
 0x1b6   : > { %v946_v62 = vrot.slane %v944_v55, 5 }
 0x1b7   : > { %v931_v60 = vor.u32 %v930_v57, %v927_v56  ;;  %v941_v61 = vor.u32 %v940_v59, %v936_v58 }
 0x1b9   : > { %v932_v63 = vrot.slane %v931_v60, 4  ;;  %v942_v0 = vrot.slane %v941_v61, 4 }
 0x1bb   : > { %v937_v1 = vsel %vm923_vm0, %v932_v63, %v936_v58  ;;  %v947_v2 = vsel %vm923_vm0, %v942_v0, %v946_v62 }
 0x1bc   : > { %950 = vst [vmem:[%s1672_s12] sm:$0xf] %v937_v1 }
 0x1bd   : > { %951 = vst [vmem:[%s1672_s12 + $0x4] sm:$0xf] %v947_v2 }
 0x1be PF: > { %s1309_s20 = sshll.u32 %s1607_s0, 3  ;;  %s965_s8 = sshll.u32 %s1672_s12, 4  ;;  %s966_s8 = int_to_ptr.vmem [resolvable:$true] %s965_s8 }
 0x1bf   : > { %s964_s29 = scalar_lea.hbm %s1759_s5, %s1309_s20  ;;  %s953_s10 = scalar_lea.sflag [#allocation7], %s231_s21 }
 0x1c0   : > { %s967_s9 = sshll.u32 %s964_s29, 4  ;;  %s1492_s0 = scalar_lea.hbm %s1759_s5, 16  ;;  %s968_s9 = int_to_ptr.hbm [resolvable:$true] %s967_s9 }
 0x1c1   : > { %s1486_s11 = sshra.s32 %s968_s9, 4  ;;  %s1487_s11 = int_to_ptr.hbm [resolvable:$true] %s1486_s11 }
 0x1c2   : > { %s1488_s13 = scalar_lea.hbm %s1487_s11, 8  ;;  %p1493_p8 = scmp.lt.s32.totalorder %s1487_s11, %s1759_s5 }
 0x1c3   : > { %p1489_p3 = scmp.ne.s32.totalorder %s1487_s11, %s1488_s13  ;;  %p1494_p9 = scmp.lt.s32.totalorder %s1492_s0, %s1488_s13 }
 0x1c5   : > { %p1490_p4 = pnand %p1489_p3, %p1624_p5  ;;  %p1495_p10 = por %p1494_p9, %p1493_p8 }
 0x1c7   : > { %p1491_p7 = pneg %p1490_p4 }
 0x1c9   : > { %p1496_p11 = pnand %p1495_p10, %p1491_p7 }
 0x1cb   : > { %1499 = shalt.err (!%p1496_p11)
}
 0x1cc   : > { %s1551_s21 = smov 64   ;;  %s1552_s12 = smov 4  }
 0x1cd   : > { %1341 = dma.vmem_to_hbm [thread:$0]  (%p1624_p5), %s966_s8, 128, %s968_s9, %s953_s10, %s1551_s21, %s1551_s21, %s1552_s12  }
 0x1ce PF: > { %p1358_p12 = scmp.ge.s32.totalorder %s1544_s25, 2  ;;  %s982_s18 = sand.u32 1, %s1532_s22  }
 0x1cf   : > { %s983_s19 = scalar_lea.sflag [#allocation7], %s982_s18 }
 0x1d0   : > { %p1351_p13 = pnand %p1358_p12, %p1628_p6 }
 0x1d2   : > { %p1352_p0 = pneg %p1351_p13 }
 0x1d4   : > { %1527 = dma.done.wait (%p1352_p0), %s983_s19, 128  }
 0x1d5   : > { %1529 = vsyncadd (%p1352_p0), %s983_s19, 4294967168  ;;  %p25_p1 = scmp.ge.s32.totalorder %s1611_s27, 4   ;;  %s1765_s22 = smov %s1536_s23 }
 0x1d6   : > { %s1766_s23 = smov %s1540_s24  ;;  %s1767_s24 = smov %s1622_s30 }
 0x1d7   : > { %s1768_s25 = smov %s1611_s27  ;;  %27 = sbr.rel (!%p25_p1) target bundleno = 11 (0xb), region = 92 }
 0x1dc   :  { %989 = vsyncpa [#allocation6], 1 }
 0x1dd   :  { %991 = vsyncpa [#allocation6 + $0x1], 1 }
 0x1de   :  { %992 = vsyncpa [#allocation9], 1 }
 0x1df   :  { %993 = vsyncpa [#allocation7], 1 }
 0x1e0   :  { %995 = vsyncpa [#allocation7 + $0x1], 1 }

</bundles_post_ra>
